<compile_context>
chip_gen: v5e
topology: v5e:2x2
jax: 0.10.0
libtpu: 0.0.40
codegen_flags: <defaults>
</compile_context>

<pallas_src>
import jax
import jax.numpy as jnp
import numpy as np
from jax.experimental import pallas as pl
from jax.experimental.pallas import tpu as pltpu

_LANE = 128                    # vreg lane width
_SUBLANE = 8                   # f32 sublane depth
_TARGET_BLOCK_BYTES = 2 << 20  # ~2 MiB per block


def _mish_kernel(x_ref, o_ref):
    x = x_ref[...].astype(jnp.float32)
    # mish(x) = x * tanh(softplus(x)) = x * n / (n + 2),  n = t*(t+2), t = e^x.
    # Clamp the exponent: for x >= 20 the ratio is exactly 1.0 in f32, so the
    # clamp does not change the result but keeps t*(t+2) finite (no overflow).
    t = jnp.exp(jnp.minimum(x, 20.0))
    n = t * (t + 2.0)
    d = n + 2.0
    # Approximate reciprocal on the EUP, refined to full f32 accuracy with two
    # Newton steps (cheap VALU ops on otherwise-idle slots).
    r = pl.reciprocal(d, approx=True)
    r = r * (2.0 - d * r)
    r = r * (2.0 - d * r)
    o_ref[...] = (x * n * r).astype(o_ref.dtype)


def _pick_row_tile(rows, itemsize):
    """Rows per block: ~2 MiB, sublane-aligned, and >= 2 grid steps if possible."""
    sub = max(_SUBLANE, 32 // itemsize)       # 8 (f32) / 16 (bf16) / 32 (int8)
    if rows <= sub:
        return rows                           # single block == full array dim
    target = max(sub, (_TARGET_BLOCK_BYTES // (_LANE * itemsize)) // sub * sub)
    # Never one giant block: keep >= 2 "parallel" steps so both v7x TensorCores
    # get work (also keeps blocks small on tiny inputs).
    half = (((rows + 1) // 2) + sub - 1) // sub * sub
    return min(target, half)


def mish_pallas(x):
    """mish(x) = x * tanh(softplus(x)); any shape / float dtype, compute in f32."""
    orig_shape, dtype = x.shape, x.dtype
    size = x.size
    if size == 0:
        return x
    itemsize = jnp.dtype(dtype).itemsize

    flat = x.reshape(-1)
    pad = (-size) % _LANE
    if pad:
        # TODO(synk): non-128-multiple sizes take a pad + post-slice fallback
        # (one extra HBM pass); lane-aligned sizes (the common case, incl. the
        # spec shape) take the zero-copy path.
        flat = jnp.pad(flat, (0, pad))
    rows = flat.shape[0] // _LANE
    x2d = flat.reshape(rows, _LANE)           # lane-dense (rows, 128) slab

    tile = _pick_row_tile(rows, itemsize)

    out2d = pl.pallas_call(
        _mish_kernel,
        out_shape=jax.ShapeDtypeStruct((rows, _LANE), dtype),
        grid=(pl.cdiv(rows, tile),),
        in_specs=[pl.BlockSpec((tile, _LANE), lambda i: (i, 0))],
        out_specs=pl.BlockSpec((tile, _LANE), lambda i: (i, 0)),
        input_output_aliases={0: 0},          # write the result in place
        compiler_params=pltpu.CompilerParams(
            dimension_semantics=("parallel",)),
    )(x2d)

    out = out2d.reshape(-1)
    if pad:
        out = out[:size]
    return out.reshape(orig_shape)


# Donating the argument lets XLA honor the in-place alias end-to-end
# (no second full-size HBM allocation).
mish = jax.jit(mish_pallas, donate_argnums=0)


def mish_reference(x):
    xf = x.astype(jnp.float32)
    return (xf * jnp.tanh(jax.nn.softplus(xf))).astype(x.dtype)


if __name__ == "__main__":
    key = jax.random.PRNGKey(0)

    # Spec-consistent small shape (mish is shape-agnostic elementwise).
    x = 4.0 * jax.random.normal(key, (2, 4, 16, 16), jnp.float32)
    ref = np.asarray(jax.block_until_ready(mish_reference(x)))   # before donation
    out = np.asarray(jax.block_until_ready(mish(x)))             # x is donated
    assert out.shape == (2, 4, 16, 16), out.shape
    np.testing.assert_allclose(out, ref, rtol=1e-5, atol=1e-6)

    # Ragged (non-128-multiple) size exercises the padded fallback path.
    y = 4.0 * jax.random.normal(jax.random.PRNGKey(1), (3, 5, 7), jnp.float32)
    ref_y = np.asarray(jax.block_until_ready(mish_reference(y)))
    out_y = np.asarray(jax.block_until_ready(mish(y)))
    np.testing.assert_allclose(out_y, ref_y, rtol=1e-5, atol=1e-6)

    print("KERNEL_OK")
</pallas_src>

<mosaic_0001>
module attributes {stable_mosaic.version = 11 : i64} {
  func.func @_mish_kernel(%arg0: i32, %arg1: memref<8x128xf32, #tpu.memory_space<vmem>>, %arg2: memref<8x128xf32, #tpu.memory_space<vmem>>) attributes {dimension_semantics = [#tpu.dimension_semantics<parallel>], iteration_bounds = array<i64: 2>, scalar_prefetch = 0 : i64, scratch_operands = 0 : i64, tpu.core_type = #tpu.core_type<tc>, window_params = [{transform_indices = @transform_0, window_bounds = array<i64: 8, 128>}, {transform_indices = @transform_1, window_bounds = array<i64: 8, 128>}]} {
    %c0 = arith.constant 0 : index
    %c0_0 = arith.constant 0 : index
    %0 = vector.load %arg1[%c0, %c0_0] : memref<8x128xf32, #tpu.memory_space<vmem>>, vector<8x128xf32>
    %cst = arith.constant 2.000000e+01 : f32
    %1 = vector.broadcast %cst : f32 to vector<8x128xf32>
    %2 = arith.minimumf %0, %1 : vector<8x128xf32>
    %3 = math.exp %2 : vector<8x128xf32>
    %cst_1 = arith.constant 2.000000e+00 : f32
    %4 = vector.broadcast %cst_1 : f32 to vector<8x128xf32>
    %5 = arith.addf %3, %4 : vector<8x128xf32>
    %6 = arith.mulf %3, %5 : vector<8x128xf32>
    %cst_2 = arith.constant 2.000000e+00 : f32
    %7 = vector.broadcast %cst_2 : f32 to vector<8x128xf32>
    %8 = arith.addf %6, %7 : vector<8x128xf32>
    %9 = tpu.reciprocal %8 {approx = true} : vector<8x128xf32> -> vector<8x128xf32>
    %10 = arith.mulf %8, %9 : vector<8x128xf32>
    %cst_3 = arith.constant 2.000000e+00 : f32
    %11 = vector.broadcast %cst_3 : f32 to vector<8x128xf32>
    %12 = arith.subf %11, %10 : vector<8x128xf32>
    %13 = arith.mulf %9, %12 : vector<8x128xf32>
    %14 = arith.mulf %8, %13 : vector<8x128xf32>
    %cst_4 = arith.constant 2.000000e+00 : f32
    %15 = vector.broadcast %cst_4 : f32 to vector<8x128xf32>
    %16 = arith.subf %15, %14 : vector<8x128xf32>
    %17 = arith.mulf %13, %16 : vector<8x128xf32>
    %18 = arith.mulf %0, %6 : vector<8x128xf32>
    %19 = arith.mulf %18, %17 : vector<8x128xf32>
    %c0_5 = arith.constant 0 : index
    %c0_6 = arith.constant 0 : index
    %20 = vector.load %arg2[%c0_5, %c0_6] : memref<8x128xf32, #tpu.memory_space<vmem>>, vector<8x128xf32>
    tpu.vector_store %arg2[%c0_5, %c0_6], %19 {strides = array<i32>} : memref<8x128xf32, #tpu.memory_space<vmem>>, vector<8x128xf32>,
    return
  }
  func.func @transform_0(%arg0: i32) -> (i32, i32) {
    %c0_i32 = arith.constant 0 : i32
    %c0_i32_0 = arith.constant 0 : i32
    return %arg0, %c0_i32 : i32, i32
  }
  func.func @transform_1(%arg0: i32) -> (i32, i32) {
    %c0_i32 = arith.constant 0 : i32
    %c0_i32_0 = arith.constant 0 : i32
    return %arg0, %c0_i32 : i32, i32
  }
}

</mosaic_0001>

<bundles_post_ra>
// kernel: mish_pallas.1
= control target key start
LH: loop header
LB: loop body
LE: loop exit
PB: predicated region body
PF: predicated region fallthrough
CT: control target
= control target key end

     0   :  { %s221_s6 = smov 0   ;;  %s238_s0 = inlined_call_operand.vmem [shape: f32[16,128], index: 0, kind: input, shape index: {}, may-alias: {0,1}]   ;;  %s239_s1 = inlined_call_operand.vmem [shape: f32[16,128], index: 1, kind: output, shape index: {}, may-alias: {0,1}]  }
   0x1 LB: > { %s182_s7 = sadd.s32 4294967295, %s209_s6   ;;  %p186_p0 = scmp.ge.s32.totalorder %s209_s6, 1  ;;  %s209_s6 = sphi %s221_s6, %s11_s6  }
   0x2   : > { %p86_p1 = scmp.lt.s32.totalorder %s209_s6, 3 }
   0x4   : > { %p87_p2 = pnand %p186_p0, %p86_p1 }
   0x5   : > { %p104_p3 = scmp.lt.s32.totalorder (!%p87_p2), %s182_s7, 1 }
   0x6   : > { %90 = sbr.rel (%p87_p2) target bundleno = 54 (0x36), region = 24 }
   0xb   : > { %s241_s7 = smov (!%p104_p3, %s182_s7), 1 }
   0xc   : > { %s187_s8 = sshll.u32 %s241_s7, 3 }
   0xd   : > { %s107_s11 = scalar_lea.vmem %s238_s0, %s187_s8  ;;  %s111_s14 = scalar_lea.vmem %s239_s1, %s187_s8 }
   0xe   : > { %v112_v0 = vld [vmem:[%s107_s11] sm:$0xff] }
   0xf   : > { %v113_v1 = vmin.f32 %v112_v0, 20.0 }
  0x11   : > { %v114_v2 = vmul.f32 1.442695, %v113_v1 }
  0x13   : > { %199 = vpow2.f32 %v114_v2 }
  0x19   : > { %v200_v3 = vpop.eup %199 }
  0x1a   : > { %v116_v4 = vadd.f32 2.0, %v200_v3 }
  0x1c   : > { %v117_v5 = vmul.f32 %v200_v3, %v116_v4 }
  0x1e   : > { %v118_v6 = vadd.f32 2.0, %v117_v5  ;;  %v126_v13 = vmul.f32 %v117_v5, %v112_v0 }
  0x20   : > { %201 = vrcp.f32 %v118_v6 }
  0x26   : > { %v202_v7 = vpop.eup %201 }
  0x27   : > { %v120_v8 = vmul.f32 %v202_v7, %v118_v6 }
  0x29   : > { %v121_v9 = vsub.f32 2.0, %v120_v8 }
  0x2b   : > { %v122_v10 = vmul.f32 %v202_v7, %v121_v9 }
  0x2d   : > { %v123_v11 = vmul.f32 %v122_v10, %v118_v6 }
  0x2f   : > { %v124_v12 = vsub.f32 2.0, %v123_v11 }
  0x31   : > { %v125_v14 = vmul.f32 %v124_v12, %v122_v10 }
  0x33   : > { %v127_v15 = vmul.f32 %v126_v13, %v125_v14 }
  0x35   : > { %128 = vst [vmem:[%s111_s14] sm:$0xff] %v127_v15 }
  0x36 PF: > { %s11_s6 = sadd.s32 1, %s209_s6  }
  0x37   : > { %p8_p4 = scmp.ge.s32.totalorder %s11_s6, 4  }
  0x39   :  { %10 = sbr.rel (!%p8_p4) target bundleno = 1 (0x1), region = 54 }

</bundles_post_ra>
